<compile_context>
chip_gen: v7x
topology: tpu7x:2x2x1
jax: 0.10.0
libtpu: 0.0.40
codegen_flags: <defaults>
</compile_context>

<pallas_src>
import jax
import jax.numpy as jnp
from jax.experimental import pallas as pl
from jax.experimental.pallas import tpu as pltpu

IN_FEATURES = 1024
LANE = 128                    # output lane dim = batch tile, so keep tb 128-aligned
TILE_BYTES_DEFAULT = 8 << 20  # per x buffer; x2 (double-buffered) = 16 MiB


def _classifier_kernel(x_ref, w_ref, b_ref, o_ref):
    # x_ref: (tb, 1024) batch tile (native dtype); w_ref: (1, 1024) f32 (resident);
    # b_ref: (1, 1) f32 in SMEM; o_ref: (1, tb) lane-dense output tile.
    x = x_ref[...]
    w = w_ref[...].astype(x.dtype)  # tiny cast (1024 elems); no-op for f32 inputs

    # Linear(1024 -> 1) with the single output unit on the *lane* axis:
    # (1, K) . (tb, K)^T -> (1, tb) on the MXU, f32 accumulation.  HIGHEST precision for
    # f32 operands (multi-pass, ~f32 accuracy); bf16 operands are MXU-native single pass.
    precision = (jax.lax.Precision.HIGHEST if x.dtype == jnp.float32
                 else jax.lax.Precision.DEFAULT)
    logits = jax.lax.dot_general(
        w, x,
        dimension_numbers=(((1,), (1,)), ((), ())),
        preferred_element_type=jnp.float32,
        precision=precision,
    ) + b_ref[0, 0]                                        # (1, tb) f32

    o_ref[...] = jax.nn.sigmoid(logits).astype(o_ref.dtype)  # EUP exp + VPU, unmasked store


def embedding_classifier(x, weight, bias, *, tb=None, vmem_limit_bytes=None):
    """x: (B, 1024) f32/bf16; weight: (1, 1024); bias: (1,) -> (B, 1) in x.dtype."""
    B, F = x.shape
    assert F == IN_FEATURES
    assert weight.shape == (1, IN_FEATURES)

    out_dtype = x.dtype
    itemsize = jnp.dtype(x.dtype).itemsize

    # ---- batch tile selection -------------------------------------------------------
    if tb is None:
        tb = TILE_BYTES_DEFAULT // (IN_FEATURES * itemsize)   # 2048 f32 / 4096 bf16
    tb = max(LANE, (int(tb) // LANE) * LANE)                   # lane-align (out lane dim)
    half = -(-B // 2)                                          # ceil(B/2)
    tb = min(tb, max(LANE, -(-half // LANE) * LANE))           # >=2 tiles when B > 128
    if tb >= B:
        tb = B                                                 # single full-array block
    grid_b = int(pl.cdiv(B, tb))
    Bp = grid_b * tb   # logical extent of the lane-dense output; NO jnp.pad copy of x —
                       # the last x block is a partial Pallas block when tb does not
                       # divide B (its garbage tail rows are sliced off below).

    weight = jnp.asarray(weight, jnp.float32)
    bias_smem = jnp.asarray(bias, jnp.float32).reshape(1, 1)

    # Raise the scoped-VMEM limit only when the tile needs it (big batches with the
    # default 8 MiB budget).  32 MiB is within physical VMEM on v5e/v6e/v7x.
    need = 2 * tb * IN_FEATURES * itemsize
    if vmem_limit_bytes is None and need > (14 << 20):
        vmem_limit_bytes = 32 << 20

    cost = pl.CostEstimate(
        flops=2 * B * IN_FEATURES,
        transcendentals=Bp,  # one sigmoid per computed row
        bytes_accessed=(B * IN_FEATURES * itemsize            # x read
                        + IN_FEATURES * 4 + 4                 # weight + bias
                        + Bp * jnp.dtype(out_dtype).itemsize),  # output write
    )

    out = pl.pallas_call(
        _classifier_kernel,
        out_shape=jax.ShapeDtypeStruct((1, Bp), out_dtype),
        grid_spec=pltpu.PrefetchScalarGridSpec(
            num_scalar_prefetch=0,
            grid=(grid_b,),
            in_specs=[
                pl.BlockSpec((tb, IN_FEATURES), lambda i: (i, 0)),   # x batch tile
                pl.BlockSpec((1, IN_FEATURES), lambda i: (0, 0)),    # weight (resident)
                pl.BlockSpec(memory_space=pltpu.MemorySpace.SMEM),   # bias scalar
            ],
            out_specs=pl.BlockSpec((1, tb), lambda i: (0, i)),       # lane-dense output
        ),
        compiler_params=pltpu.CompilerParams(
            dimension_semantics=("parallel",),   # shard batch tiles across TCs on v7x
            vmem_limit_bytes=vmem_limit_bytes,
        ),
        cost_estimate=cost,
    )(x, weight, bias_smem)

    # (1, grid_b*tb) -> (B, 1): row-major-identical reshape + tiny slice (no full copy).
    return out.reshape(Bp, 1)[:B]


def _reference(x, weight, bias):
    # Pure-JAX reference in exact f32 elementwise math (dropout(eval) = identity).
    xf = x.astype(jnp.float32)
    logits = jnp.sum(xf * weight.astype(jnp.float32), axis=-1, keepdims=True) + bias
    return jax.nn.sigmoid(logits)


if __name__ == "__main__":
    key = jax.random.PRNGKey(0)
    kx, kw, kb = jax.random.split(key, 3)

    # Deterministic nn.Linear-style init (uniform in +-1/sqrt(fan_in)).
    bound = 1.0 / (IN_FEATURES ** 0.5)
    weight = jax.random.uniform(kw, (1, IN_FEATURES), jnp.float32, -bound, bound)
    bias = jax.random.uniform(kb, (1,), jnp.float32, -bound, bound)

    # Case 1: small f32 batch -> single full-array block (no padding, no tiling).
    B = 20
    x = jax.random.normal(kx, (B, IN_FEATURES), dtype=jnp.float32)
    out = jax.block_until_ready(embedding_classifier(x, weight, bias))
    ref = _reference(x, weight, bias)
    assert out.shape == (B, 1)
    assert jnp.allclose(out, ref, atol=1e-5, rtol=1e-5), "f32 single-block mismatch"

    # Case 2: ragged f32 batch -> grid_b=2 (megacore split) with a partial last block.
    B2 = 300
    x2 = jax.random.normal(kx, (B2, IN_FEATURES), dtype=jnp.float32)
    out2 = jax.block_until_ready(embedding_classifier(x2, weight, bias))
    ref2 = _reference(x2, weight, bias)
    assert out2.shape == (B2, 1)
    assert jnp.allclose(out2, ref2, atol=1e-5, rtol=1e-5), "f32 ragged multi-tile mismatch"

    # Case 3: explicit small tile -> 3 grid steps, ragged tail, same result.
    out3 = jax.block_until_ready(embedding_classifier(x2, weight, bias, tb=128))
    assert out3.shape == (B2, 1)
    assert jnp.allclose(out3, ref2, atol=1e-5, rtol=1e-5), "f32 tb=128 mismatch"

    # Case 4: bf16 inputs (half the HBM traffic; MXU-native operands).
    x4 = x.astype(jnp.bfloat16)
    out4 = jax.block_until_ready(embedding_classifier(x4, weight, bias))
    ref4 = _reference(x4, weight, bias)
    assert out4.shape == (B, 1)
    assert jnp.allclose(out4.astype(jnp.float32), ref4, atol=2e-2, rtol=2e-2), "bf16 mismatch"

    print("KERNEL_OK")
</pallas_src>

<mosaic_0001>
module attributes {stable_mosaic.version = 11 : i64} {
  func.func @_classifier_kernel(%arg0: i32, %arg1: memref<20x1024xf32, #tpu.memory_space<vmem>>, %arg2: memref<1x1024xf32, #tpu.memory_space<vmem>>, %arg3: memref<1x1xf32, #tpu.memory_space<smem>>, %arg4: memref<1x20xf32, #tpu.memory_space<vmem>>) attributes {dimension_semantics = [#tpu.dimension_semantics<parallel>], iteration_bounds = array<i64: 1>, scalar_prefetch = 0 : i64, scratch_operands = 0 : i64, tpu.core_type = #tpu.core_type<tc>, window_params = [{transform_indices = @transform_0, window_bounds = array<i64: 20, 1024>}, {pipeline_mode = #tpu.pipeline_mode<synchronous>, transform_indices = @transform_1, window_bounds = array<i64: 1, 1024>}, {transform_indices = @transform_2, window_bounds = array<i64: 1, 1>}, {transform_indices = @transform_3, window_bounds = array<i64: 1, 20>}]} {
    %c0 = arith.constant 0 : index
    %c0_0 = arith.constant 0 : index
    %0 = vector.load %arg1[%c0, %c0_0] : memref<20x1024xf32, #tpu.memory_space<vmem>>, vector<20x1024xf32>
    %c0_1 = arith.constant 0 : index
    %c0_2 = arith.constant 0 : index
    %1 = vector.load %arg2[%c0_1, %c0_2] : memref<1x1024xf32, #tpu.memory_space<vmem>>, vector<1x1024xf32>
    %cst = arith.constant dense<0.000000e+00> : vector<1x20xf32>
    %2 = tpu.matmul %1, %0, %cst {dimension_numbers = #tpu.dot_dimension_numbers<[1], [1], [0], [0], [0, 0, 1, 0], [], []>, precision = #tpu.contract_precision<fp32>} : vector<1x1024xf32>, vector<20x1024xf32>, vector<1x20xf32> -> vector<1x20xf32>
    %c0_3 = arith.constant 0 : index
    %c0_4 = arith.constant 0 : index
    %3 = memref.load %arg3[%c0_3, %c0_4] : memref<1x1xf32, #tpu.memory_space<smem>>
    %4 = vector.broadcast %3 : f32 to vector<1x20xf32>
    %5 = arith.addf %2, %4 : vector<1x20xf32>
    %6 = arith.negf %5 : vector<1x20xf32>
    %7 = math.exp %6 : vector<1x20xf32>
    %cst_5 = arith.constant 1.000000e+00 : f32
    %8 = vector.broadcast %cst_5 : f32 to vector<1x20xf32>
    %9 = arith.addf %8, %7 : vector<1x20xf32>
    %10 = arith.divf %8, %9 : vector<1x20xf32>
    %c0_6 = arith.constant 0 : index
    %c0_7 = arith.constant 0 : index
    %11 = vector.load %arg4[%c0_6, %c0_7] : memref<1x20xf32, #tpu.memory_space<vmem>>, vector<1x20xf32>
    tpu.vector_store %arg4[%c0_6, %c0_7], %10 {strides = array<i32>} : memref<1x20xf32, #tpu.memory_space<vmem>>, vector<1x20xf32>,
    return
  }
  func.func @transform_0(%arg0: i32) -> (i32, i32) {
    %c0_i32 = arith.constant 0 : i32
    %c0_i32_0 = arith.constant 0 : i32
    return %arg0, %c0_i32 : i32, i32
  }
  func.func @transform_1(%arg0: i32) -> (i32, i32) {
    %c0_i32 = arith.constant 0 : i32
    %c0_i32_0 = arith.constant 0 : i32
    %c0_i32_1 = arith.constant 0 : i32
    return %c0_i32, %c0_i32_0 : i32, i32
  }
  func.func @transform_2(%arg0: i32) -> (i32, i32) {
    %c0_i32 = arith.constant 0 : i32
    %c0_i32_0 = arith.constant 0 : i32
    %c0_i32_1 = arith.constant 0 : i32
    return %c0_i32, %c0_i32_0 : i32, i32
  }
  func.func @transform_3(%arg0: i32) -> (i32, i32) {
    %c0_i32 = arith.constant 0 : i32
    %c0_i32_0 = arith.constant 0 : i32
    return %c0_i32, %arg0 : i32, i32
  }
}

</mosaic_0001>

<bundles_post_ra>
// kernel: tpu_custom_call.1
= control target key start
LH: loop header
LB: loop body
LE: loop exit
PB: predicated region body
PF: predicated region fallthrough
CT: control target
= control target key end

     0   :  { %9 = vsyncpa [#allocation4], 0  ;;  %s2980_s0 = inlined_call_operand.hbm [shape: f32[20,1024], index: 0, kind: input, shape index: {}]   ;;  %s2981_s1 = inlined_call_operand.hbm [shape: f32[1,1024], index: 1, kind: input, shape index: {}]   ;;  %s2982_s2 = inlined_call_operand.<no memory space> [shape: f32[1,1], index: 2, kind: input, shape index: {}]   ;;  %s2983_s3 = inlined_call_operand.hbm [shape: f32[1,20], index: 3, kind: output, shape index: {}]  }
   0x1   :  { %10 = vsyncpa [#allocation7], 0 }
   0x2   :  { %11 = vsyncpa [#allocation5], 0  ;;  %s2454_s12 = smov [#allocation3]   ;;  %s2382_s16 = scalar_lea.hbm %s2980_s0, 3072 }
   0x3   :  { %s17_s13 = sshll.u32 %s2454_s12, 4  ;;  %p2383_p0 = scmp.ne.s32.totalorder %s2980_s0, %s2382_s16  ;;  %s18_s13 = int_to_ptr.vmem [resolvable:$true] %s17_s13 }
   0x4   :  { %p2386_p1 = scmp.lt.u32.totalorder %s2382_s16, %s2980_s0 }
   0x6   :  { %p2388_p2 = pnand %p2386_p1, %p2383_p0 }
   0x8   :  { %2391 = shalt.err (!%p2388_p2)
}
   0x9   :  { %s2392_s21 = scalar_lea.vmem %s18_s13, 3072  ;;  %p2397_p4 = scmp.lt.s32.totalorder %s18_s13, %s18_s13 }
   0xa   :  { %p2393_p3 = scmp.ne.s32.totalorder %s18_s13, %s2392_s21  ;;  %p2398_p5 = scmp.lt.s32.totalorder %s2392_s21, %s2392_s21 }
   0xc   :  { %p2399_p6 = por %p2398_p5, %p2397_p4 }
   0xe   :  { %p2400_p7 = pnand %p2399_p6, %p2393_p3 }
  0x10   :  { %2403 = shalt.err (!%p2400_p7)
}
  0x11   :  { %s2455_s22 = smov 1024   ;;  %s2456_s23 = smov 64  }
  0x12   :  { %23 = dma.hbm_to_vmem [thread:$0]  %s2980_s0, 3072, %s18_s13, [#allocation4], %s2455_s22, %s2455_s22, %s2456_s23  }
  0x13   :  { %s2457_s26 = smov [#allocation6]   ;;  %s2404_s30 = scalar_lea.hbm %s2981_s1, 128 }
  0x14   :  { %s30_s27 = sshll.u32 %s2457_s26, 4  ;;  %p2405_p8 = scmp.ne.s32.totalorder %s2981_s1, %s2404_s30  ;;  %s31_s27 = int_to_ptr.vmem [resolvable:$true] %s30_s27 }
  0x15   :  { %p2408_p9 = scmp.lt.u32.totalorder %s2404_s30, %s2981_s1 }
  0x17   :  { %p2410_p10 = pnand %p2408_p9, %p2405_p8 }
  0x19   :  { %2413 = shalt.err (!%p2410_p10)
}
  0x1a   :  { %s2414_s8 = scalar_lea.vmem %s31_s27, 128  ;;  %p2419_p12 = scmp.lt.s32.totalorder %s31_s27, %s31_s27 }
  0x1b   :  { %p2415_p11 = scmp.ne.s32.totalorder %s31_s27, %s2414_s8  ;;  %p2420_p13 = scmp.lt.s32.totalorder %s2414_s8, %s2414_s8 }
  0x1d   :  { %p2421_p0 = por %p2420_p13, %p2419_p12 }
  0x1f   :  { %p2422_p1 = pnand %p2421_p0, %p2415_p11 }
  0x21   :  { %2425 = shalt.err (!%p2422_p1)
}
  0x22   :  { %33 = dma.hbm_to_vmem [thread:$0]  %s2981_s1, 128, %s31_s27, [#allocation7]  }
  0x23   :  { %2448 = dma.done.wait [#allocation4], 3072  }
  0x24   :  { %2449 = vsyncadd [#allocation4], 4294964224 }
  0x25   :  { %2450 = dma.done.wait [#allocation7], 128  }
  0x26   :  { %2451 = vsyncadd [#allocation7], 4294967168  ;;  %v70_v0 = vlaneseq  ;;  %v43_v3 = vld [vmem:[#allocation3 + $0x8] sm:$0xff]  ;;  %v42_v13 = vld [vmem:[#allocation3] sm:$0xff]  ;;  %s2458_s11 = smov [#allocation8]   ;;  %vm2212_vm0 = vcmask 155648  }
  0x27   :  { %v51_v4 = vld [vmem:[#allocation3 + $0x48] sm:$0xff]  ;;  %v110_v9 = vand.u32 4294901760, %v43_v3  ;;  %v50_v14 = vld [vmem:[#allocation3 + $0x40] sm:$0xff]  ;;  %v112_v16 = vand.u32 4294901760, %v42_v13  ;;  %s2220_s12 = sshll.u32 %s2458_s11, 4  ;;  %s2221_s12 = int_to_ptr.vmem [resolvable:$true] %s2220_s12 }
  0x28   :  { %v2503_v1 = vshrl.u32 %v70_v0, 7  ;;  %v47_v5 = vld [vmem:[#allocation3 + $0x28] sm:$0xff]  ;;  %v114_v10 = vand.u32 4294901760, %v51_v4  ;;  %v116_v17 = vand.u32 4294901760, %v50_v14  ;;  %v46_v18 = vld [vmem:[#allocation3 + $0x20] sm:$0xff]  ;;  %s2426_s13 = scalar_lea.vmem %s2221_s12, 16  ;;  %p2431_p3 = scmp.lt.s32.totalorder %s2221_s12, %s2221_s12 }
  0x29   :  { %v55_v11 = vld [vmem:[#allocation3 + $0x68] sm:$0xff]  ;;  %v1158_v12 = vand.u32 4294901760, %v47_v5  ;;  %v54_v19 = vld [vmem:[#allocation3 + $0x60] sm:$0xff]  ;;  %v2513_v22 = vsub.f32 %v43_v3, %v110_v9  ;;  %v2529_v31 = vsub.f32 %v42_v13, %v112_v16  ;;  %v1160_v34 = vand.u32 4294901760, %v46_v18  ;;  %p2427_p2 = scmp.ne.s32.totalorder %s2221_s12, %s2426_s13 }
  0x2a   :  { %v76_v2 = vsub.s32 1, %v2503_v1  ;;  %v92_v6 = vsub.s32 5, %v2503_v1  ;;  %v72_v7 = vsub.s32 0, %v2503_v1  ;;  %v88_v8 = vsub.s32 4, %v2503_v1  ;;  %v2509_v20 = vld [vmem:[#allocation6] sm:$0xff] }
  0x2b   :  { %v1162_v15 = vand.u32 4294901760, %v55_v11  ;;  %v2511_v21 = vpack.c.bf16 %v114_v10, %v110_v9  ;;  %v2515_v23 = vsub.f32 %v51_v4, %v114_v10  ;;  %v2517_v24 = vsub.f32 %v47_v5, %v1158_v12  ;;  %v2519_v25 = vld [vmem:[#allocation3 + $0x88] sm:$0xf]  ;;  %v58_v27 = vld [vmem:[#allocation3 + $0x80] sm:$0xf] }
  0x2c   :  { %v2521_v26 = vld [vmem:[#allocation3 + $0xa8] sm:$0xf]  ;;  %v2527_v30 = vpack.c.bf16 %v116_v17, %v112_v16  ;;  %v62_v32 = vld [vmem:[#allocation3 + $0xa0] sm:$0xf]  ;;  %v2532_v33 = vsub.f32 %v50_v14, %v116_v17  ;;  %v1164_v35 = vand.u32 4294901760, %v54_v19  ;;  %v2535_v36 = vand.u32 4294901760, %v2519_v25 }
  0x2d   :  { %v2523_v28 = vpack.c.bf16 %v1162_v15, %v1158_v12  ;;  %v2525_v29 = vsub.f32 %v55_v11, %v1162_v15  ;;  %2232 = vmatprep.subr.bf16.mxu1 %v2511_v21  ;;  %v2540_v37 = vand.u32 4294901760, %v2521_v26  ;;  %v2542_v38 = vand.u32 4294901760, %v58_v27 }
  0x2e   :  { %2234 = vmatpush1.bf16.xpose.msra.mxu1 %v2527_v30  ;;  %v2544_v39 = vand.u32 4294901760, %v62_v32  ;;  %v77_v40 = vrot.slane %v2509_v20, %v76_v2  ;;  %v2547_v41 = vpack.c.bf16 %v1164_v35, %v1160_v34  ;;  %v2549_v42 = vsub.f32 %v46_v18, %v1160_v34 }
  0x2f   :  { %2280 = vmatprep.subr.bf16.mxu0 %v2523_v28  ;;  %v2551_v43 = vsub.f32 %v54_v19, %v1164_v35  ;;  %119 = vmatprep.subr.mxu1 %v2535_v36  ;;  %v198_v44 = vand.u32 4294901760, %v2513_v22  ;;  %v2556_v45 = vsub.f32 %v58_v27, %v2542_v38  ;;  %v210_v48 = vand.u32 4294901760, %v2515_v23 }
  0x30   :  { %v2559_v46 = vsub.f32 %v62_v32, %v2544_v39  ;;  %v2561_v47 = vand.u32 4294901760, %v77_v40  ;;  %2282 = vmatpush1.bf16.xpose.msra.mxu0 %v2547_v41  ;;  %v93_v50 = vrot.slane %v2509_v20, %v92_v6  ;;  %v1246_v51 = vand.u32 4294901760, %v2517_v24 }
  0x31   :  { %v199_v49 = vsub.f32 %v2513_v22, %v198_v44  ;;  %v1258_v52 = vand.u32 4294901760, %v2525_v29  ;;  %1167 = vmatprep.subr.mxu0 %v2540_v37  ;;  %v211_v54 = vsub.f32 %v2515_v23, %v210_v48  ;;  %v73_v55 = vrot.slane %v2509_v20, %v72_v7 }
  0x32   :  { %v2573_v53 = vsub.f32 %v77_v40, %v2561_v47  ;;  %v204_v56 = vand.u32 4294901760, %v2529_v31  ;;  %v2580_v58 = vand.u32 4294901760, %v93_v50  ;;  %v1247_v59 = vsub.f32 %v2517_v24, %v1246_v51 }
  0x33   :  { %v200_v57 = vand.u32 4294901760, %v199_v49  ;;  %v1259_v60 = vsub.f32 %v2525_v29, %v1258_v52  ;;  %v212_v62 = vand.u32 4294901760, %v211_v54  ;;  %v2589_v63 = vand.u32 4294901760, %v73_v55 }
  0x34   :  { %v182_v61 = vand.u32 4294901760, %v2573_v53  ;;  %v205_v0 = vsub.f32 %v2529_v31, %v204_v56  ;;  %v2595_v2 = vsub.f32 %v93_v50, %v2580_v58  ;;  %v1248_v3 = vand.u32 4294901760, %v1247_v59 }
  0x35   :  { %v1260_v4 = vand.u32 4294901760, %v1259_v60  ;;  %v216_v5 = vand.u32 4294901760, %v2532_v33  ;;  %v2235_v7 = vpack.c.bf16 %v212_v62, %v200_v57  ;;  %v2603_v9 = vsub.f32 %v73_v55, %v2589_v63 }
  0x36   :  { %121 = vmatpush1.xpose.msra.mxu1 %v2542_v38  ;;  %v183_v6 = vsub.f32 %v2573_v53, %v182_v61  ;;  %v206_v10 = vand.u32 4294901760, %v205_v0  ;;  %v1230_v11 = vand.u32 4294901760, %v2595_v2  ;;  %v89_v14 = vrot.slane %v2509_v20, %v88_v8 }
  0x37   :  { %v2283_v12 = vpack.c.bf16 %v1260_v4, %v1248_v3  ;;  %v217_v13 = vsub.f32 %v2532_v33, %v216_v5  ;;  %2236 = vmatprep.subr.bf16.mxu1 %v2235_v7  ;;  %v188_v16 = vand.u32 4294901760, %v2603_v9  ;;  %v1252_v17 = vand.u32 4294901760, %v2549_v42 }
  0x38   :  { %v184_v15 = vand.u32 4294901760, %v183_v6  ;;  %v1264_v18 = vand.u32 4294901760, %v2551_v43  ;;  %1169 = vmatpush1.xpose.msra.mxu0 %v2544_v39  ;;  %v1231_v19 = vsub.f32 %v2595_v2, %v1230_v11  ;;  %v2619_v32 = vand.u32 4294901760, %v89_v14 }
  0x39   :  { %v218_v27 = vand.u32 4294901760, %v217_v13  ;;  %v2623_v8 = vsub.f32 %v2519_v25, %v2535_v36  ;;  %2284 = vmatprep.subr.bf16.mxu0 %v2283_v12  ;;  %v189_v34 = vsub.f32 %v2603_v9, %v188_v16  ;;  %v1253_v35 = vsub.f32 %v2549_v42, %v1252_v17 }
  0x3a   :  { %185 = vmatprep.mubr.f32.mxu1 %v184_v15  ;;  %v1265_v40 = vsub.f32 %v2551_v43, %v1264_v18  ;;  %v228_v49 = vand.u32 4294901760, %v2556_v45  ;;  %v1232_v50 = vand.u32 4294901760, %v1231_v19  ;;  %v2636_v25 = vsub.f32 %v89_v14, %v2619_v32 }
  0x3b   :  { %v2237_v54 = vpack.c.bf16 %v218_v27, %v206_v10  ;;  %v222_v55 = vand.u32 4294901760, %v2623_v8  ;;  %v190_v57 = vand.u32 4294901760, %v189_v34  ;;  %v1254_v59 = vand.u32 4294901760, %v1253_v35 }
  0x3c   :  { %v1266_v60 = vand.u32 4294901760, %v1265_v40  ;;  %v2641_v62 = vsub.f32 %v2521_v26, %v2540_v37  ;;  %1233 = vmatprep.mubr.f32.mxu0 %v1232_v50  ;;  %v1236_v0 = vand.u32 4294901760, %v2636_v25  ;;  %v229_v26 = vsub.f32 %v2556_v45, %v228_v49 }
  0x3d   :  { %v223_v3 = vsub.f32 %v2623_v8, %v222_v55  ;;  %191 = vmatmul.mubr.f32.vlgmr.msra.gmra.mrb[0].mxu1 %v190_v57  ;;  %v1276_v13 = vand.u32 4294901760, %v2559_v46  ;;  %v2239_v34 = vpack.c.bf16 %v2515_v23, %v2513_v22  ;;  %v84_v35 = vsub.s32 3, %v2503_v1 }
  0x3e   :  { %v1270_v4 = vand.u32 4294901760, %v2641_v62  ;;  %2238 = vmatpush1.bf16.xpose.msra.mxu1 %v2237_v54  ;;  %v1237_v6 = vsub.f32 %v2636_v25, %v1236_v0  ;;  %291 = vmatprep.mubr.f32.mxu1 %v2561_v47  ;;  %v2285_v10 = vpack.c.bf16 %v1266_v60, %v1254_v59  ;;  %v230_v19 = vand.u32 4294901760, %v229_v26 }
  0x3f   :  { %v224_v7 = vand.u32 4294901760, %v223_v3  ;;  %v1277_v27 = vsub.f32 %v2559_v46, %v1276_v13  ;;  %v100_v40 = vsub.s32 7, %v2503_v1  ;;  %v2241_v50 = vpack.c.bf16 %v2532_v33, %v2529_v31  ;;  %v53_v31 = vld [vmem:[#allocation3 + $0x58] sm:$0xff] }
  0x40   :  { %v1271_v12 = vsub.f32 %v2641_v62, %v1270_v4  ;;  %v1238_v14 = vand.u32 4294901760, %v1237_v6  ;;  %v80_v54 = vsub.s32 2, %v2503_v1  ;;  %v85_v59 = vrot.slane %v2509_v20, %v84_v35 }
  0x41   :  { %225 = vmatprep.subr.mxu1 %v224_v7  ;;  %v1278_v57 = vand.u32 4294901760, %v1277_v27  ;;  %v2287_v60 = vpack.c.bf16 %v2525_v29, %v2517_v24  ;;  %v2674_v3 = vrot.slane %v2509_v20, %v100_v40  ;;  %v2289_v7 = vpack.c.bf16 %v2551_v43, %v2549_v42  ;;  %v45_v29 = vld [vmem:[#allocation3 + $0x18] sm:$0xff] }
  0x42   :  { %v1272_v15 = vand.u32 4294901760, %v1271_v12  ;;  %1239 = vmatmul.mubr.f32.vlgmr.msra.gmra.mrb[0].mxu0 %v1238_v14  ;;  %v2679_v6 = vrot.slane %v2509_v20, %v80_v54  ;;  %v96_v26 = vsub.s32 6, %v2503_v1  ;;  %v2247_v1 = vpack.c.bf16 %v210_v48, %v198_v44  ;;  %v65_v14 = vld [vmem:[#allocation3 + $0xb8] sm:$0xf] }
  0x43   :  { %2286 = vmatpush1.bf16.xpose.msra.mxu0 %v2285_v10  ;;  %1339 = vmatprep.mubr.f32.mxu0 %v2580_v58  ;;  %v2295_v22 = vpack.c.bf16 %v1258_v52, %v1246_v51  ;;  %v2297_v23 = vpack.c.bf16 %v1264_v18, %v1252_v17  ;;  %v2730_v24 = vand.u32 4294901760, %v85_v59  ;;  %v634_v42 = vand.u32 4294901760, %v45_v29  ;;  %v44_v52 = vld [vmem:[#allocation3 + $0x10] sm:$0xff] }
  0x44   :  { %1273 = vmatprep.subr.mxu0 %v1272_v15  ;;  %v2689_v10 = vrot.slane %v2509_v20, %v96_v26  ;;  %v2249_v20 = vpack.c.bf16 %v216_v5, %v204_v56  ;;  %v638_v43 = vand.u32 4294901760, %v53_v31  ;;  %v2742_v44 = vand.u32 4294901760, %v2674_v3  ;;  %v57_v56 = vld [vmem:[#allocation3 + $0x78] sm:$0xff]  ;;  %v60_v15 = vld [vmem:[#allocation3 + $0x90] sm:$0xf] }
  0x45   :  { %v2738_v33 = vsub.f32 %v85_v59, %v2730_v24  ;;  %v2745_v48 = vsub.f32 %v45_v29, %v634_v42  ;;  %v2816_v59 = vand.u32 4294901760, %v65_v14 }
  0x46   :  { %231 = vmatpush1.xpose.msra.mxu1 %v230_v19  ;;  %v2747_v51 = vsub.f32 %v53_v31, %v638_v43  ;;  %v2801_v35 = vand.u32 4294901760, %v2689_v10 }
  0x47   :  { %2240 = vmatprep.subr.bf16.mxu1 %v2239_v34 }
  0x49   :  { %293 = vmatmul.mubr.f32.vlgmr.msra.gmra.mrb[0].mxu1 %v2589_v63 }
  0x4a   :  { %2242 = vmatpush1.bf16.xpose.msra.mxu1 %v2241_v50  ;;  %376 = vmatprep.mubr.f32.mxu1 %v2573_v53  ;;  %v52_v53 = vld [vmem:[#allocation3 + $0x50] sm:$0xff] }
  0x4b   :  { %1279 = vmatpush1.xpose.msra.mxu0 %v1278_v57  ;;  %312 = vmatprep.subr.mxu1 %v2623_v8  ;;  %v640_v5 = vand.u32 4294901760, %v52_v53 }
  0x4c   :  { %2288 = vmatprep.subr.bf16.mxu0 %v2287_v60 }
  0x4d   :  { %v2768_v18 = vsub.f32 %v52_v53, %v640_v5 }
  0x4e   :  { %1341 = vmatmul.mubr.f32.vlgmr.msra.gmra.mrb[0].mxu0 %v2619_v32 }
  0x4f   :  { %2290 = vmatpush1.bf16.xpose.msra.mxu0 %v2289_v7  ;;  %1424 = vmatprep.mubr.f32.mxu0 %v2595_v2  ;;  %v636_v2 = vand.u32 4294901760, %v44_v52  ;;  %v740_v34 = vand.u32 4294901760, %v2768_v18  ;;  %v2823_v7 = vand.u32 4294901760, %v60_v15 }
  0x50   :  { %1360 = vmatprep.subr.mxu0 %v2641_v62 }
  0x51   :  { %v2766_v17 = vsub.f32 %v44_v52, %v636_v2  ;;  %v2853_v53 = vsub.f32 %v60_v15, %v2823_v7 }
  0x52   :  { %315 = vmatpush1.xpose.msra.mxu1 %v2556_v45  ;;  %v49_v45 = vld [vmem:[#allocation3 + $0x38] sm:$0xff] }
  0x53   :  { %2244 = vmatprep.subr.bf16.mxu1 %v2511_v21  ;;  %v728_v27 = vand.u32 4294901760, %v2766_v17  ;;  %v752_v15 = vand.u32 4294901760, %v2853_v53 }
  0x55   :  { %379 = vmatmul.mubr.f32.vlgmr.msra.gmra.mrb[0].mxu1 %v2603_v9  ;;  %v1682_v9 = vand.u32 4294901760, %v49_v45 }
  0x56   :  { %2246 = vmatpush1.bf16.xpose.msra.mxu1 %v2527_v30  ;;  %457 = vmatprep.mubr.f32.mxu1 %v182_v61  ;;  %v2757_v61 = vsub.f32 %v2674_v3, %v2742_v44 }
  0x57   :  { %1363 = vmatpush1.xpose.msra.mxu0 %v2559_v46  ;;  %393 = vmatprep.subr.mxu1 %v2535_v36  ;;  %v2763_v46 = vand.u32 4294901760, %v2679_v6  ;;  %v2779_v62 = vsub.f32 %v49_v45, %v1682_v9 }
  0x58   :  { %2292 = vmatprep.subr.bf16.mxu0 %v2523_v28 }
  0x59   :  { %v1770_v60 = vand.u32 4294901760, %v2779_v62 }
  0x5a   :  { %1427 = vmatmul.mubr.f32.vlgmr.msra.gmra.mrb[0].mxu0 %v2636_v25 }
  0x5b   :  { %2294 = vmatpush1.bf16.xpose.msra.mxu0 %v2547_v41  ;;  %1505 = vmatprep.mubr.f32.mxu0 %v1230_v11  ;;  %v722_v11 = vand.u32 4294901760, %v2745_v48  ;;  %v1771_v52 = vsub.f32 %v2779_v62, %v1770_v60 }
  0x5c   :  { %1441 = vmatprep.subr.mxu0 %v2540_v37 }
  0x5e   :  { %395 = vmatpush1.xpose.msra.mxu1 %v2542_v38 }
  0x5f   :  { %2248 = vmatprep.subr.bf16.mxu1 %v2247_v1 }
  0x61   :  { %461 = vmatmul.mubr.f32.vlgmr.msra.gmra.mrb[0].mxu1 %v188_v16  ;;  %v734_v16 = vand.u32 4294901760, %v2747_v51 }
  0x62   :  { %2250 = vmatpush1.bf16.xpose.msra.mxu1 %v2249_v20  ;;  %549 = vmatprep.mubr.f32.mxu1 %v2561_v47 }
  0x63   :  { %1443 = vmatpush1.xpose.msra.mxu0 %v2544_v39  ;;  %485 = vmatprep.subr.mxu1 %v222_v55  ;;  %v1754_v55 = vand.u32 4294901760, %v2757_v61 }
  0x64   :  { %2296 = vmatprep.subr.bf16.mxu0 %v2295_v22  ;;  %v729_v22 = vsub.f32 %v2766_v17, %v728_v27 }
  0x65   :  { %v1755_v54 = vsub.f32 %v2757_v61, %v1754_v55 }
  0x66   :  { %1509 = vmatmul.mubr.f32.vlgmr.msra.gmra.mrb[0].mxu0 %v1236_v0 }
  0x67   :  { %2298 = vmatpush1.bf16.xpose.msra.mxu0 %v2297_v23  ;;  %1597 = vmatprep.mubr.f32.mxu0 %v2580_v58  ;;  %v741_v23 = vsub.f32 %v2768_v18, %v740_v34  ;;  %v1756_v29 = vand.u32 4294901760, %v1755_v54 }
  0x68   :  { %1533 = vmatprep.subr.mxu0 %v1270_v4  ;;  %v2783_v4 = vpack.c.bf16 %v640_v5, %v636_v2  ;;  %v730_v5 = vand.u32 4294901760, %v729_v22 }
  0x6a   :  { %489 = vmatpush1.xpose.msra.mxu1 %v228_v49  ;;  %v2774_v49 = vpack.c.bf16 %v638_v43, %v634_v42 }
  0x6b   :  { %2252 = vmatprep.subr.bf16.mxu1 %v2511_v21  ;;  %v706_v21 = vand.u32 4294901760, %v2738_v33 }
  0x6d   :  { %551 = vmatmul.mubr.f32.vlgmr.msra.gmra.mrb[0].mxu1 %v2589_v63  ;;  %v707_v8 = vsub.f32 %v2738_v33, %v706_v21 }
  0x6e   :  { %2254 = vmatpush1.bf16.xpose.msra.mxu1 %v2527_v30  ;;  %627 = vmatprep.mubr.f32.mxu1 %v2561_v47  ;;  %v48_v30 = vld [vmem:[#allocation3 + $0x30] sm:$0xff] }
  0x6f   :  { %1537 = vmatpush1.xpose.msra.mxu0 %v1276_v13  ;;  %565 = vmatprep.subr.mxu1 %v2535_v36  ;;  %v56_v47 = vld [vmem:[#allocation3 + $0x70] sm:$0xff]  ;;  %v1686_v36 = vand.u32 4294901760, %v57_v56  ;;  %v1684_v25 = vand.u32 4294901760, %v48_v30  ;;  %v708_v19 = vand.u32 4294901760, %v707_v8 }
  0x70   :  { %2300 = vmatprep.subr.bf16.mxu0 %v2523_v28  ;;  %v61_v28 = vld [vmem:[#allocation3 + $0x98] sm:$0xf]  ;;  %v1688_v12 = vand.u32 4294901760, %v56_v47 }
  0x71   :  { %v2781_v0 = vsub.f32 %v57_v56, %v1686_v36  ;;  %v2785_v13 = vand.u32 4294901760, %v61_v28  ;;  %v2804_v40 = vsub.f32 %v48_v30, %v1684_v25  ;;  %v2814_v57 = vpack.c.bf16 %v1686_v36, %v1682_v9  ;;  %v64_v56 = vld [vmem:[#allocation3 + $0xb0] sm:$0xf] }
  0x72   :  { %1599 = vmatmul.mubr.f32.vlgmr.msra.gmra.mrb[0].mxu0 %v2619_v32  ;;  %v2806_v50 = vsub.f32 %v56_v47, %v1688_v12  ;;  %v742_v30 = vand.u32 4294901760, %v741_v23 }
  0x73   :  { %2302 = vmatpush1.bf16.xpose.msra.mxu0 %v2547_v41  ;;  %1675 = vmatprep.mubr.f32.mxu0 %v2580_v58  ;;  %v723_v41 = vsub.f32 %v2745_v48, %v722_v11  ;;  %v735_v58 = vsub.f32 %v2747_v51, %v734_v16  ;;  %v1782_v3 = vand.u32 4294901760, %v2781_v0  ;;  %v1776_v31 = vand.u32 4294901760, %v2804_v40 }
  0x74   :  { %1613 = vmatprep.subr.mxu0 %v2540_v37  ;;  %v2795_v37 = vsub.f32 %v2679_v6, %v2763_v46  ;;  %v2821_v6 = vpack.c.bf16 %v1688_v12, %v1684_v25  ;;  %v1788_v42 = vand.u32 4294901760, %v2806_v50  ;;  %v2872_v12 = vand.u32 4294901760, %v64_v56 }
  0x75   :  { %v724_v26 = vand.u32 4294901760, %v723_v41  ;;  %v736_v20 = vand.u32 4294901760, %v735_v58  ;;  %v1777_v47 = vsub.f32 %v2804_v40, %v1776_v31  ;;  %v2261_v41 = vpack.c.bf16 %v742_v30, %v730_v5 }
  0x76   :  { %567 = vmatpush1.xpose.msra.mxu1 %v2542_v38  ;;  %v2812_v38 = vsub.f32 %v61_v28, %v2785_v13  ;;  %v712_v1 = vand.u32 4294901760, %v2795_v37  ;;  %v1789_v36 = vsub.f32 %v2806_v50, %v1788_v42  ;;  %v1772_v28 = vand.u32 4294901760, %v1771_v52 }
  0x77   :  { %2256 = vmatprep.subr.bf16.mxu1 %v2774_v49  ;;  %v2259_v2 = vpack.c.bf16 %v736_v20, %v724_v26  ;;  %v1778_v54 = vand.u32 4294901760, %v1777_v47  ;;  %v753_v52 = vsub.f32 %v2853_v53, %v752_v15  ;;  %v2263_v30 = vpack.c.bf16 %v2747_v51, %v2745_v48 }
  0x78   :  { %v746_v43 = vand.u32 4294901760, %v2812_v38  ;;  %v713_v45 = vsub.f32 %v2795_v37, %v712_v1  ;;  %v1790_v26 = vand.u32 4294901760, %v1789_v36  ;;  %v2265_v47 = vpack.c.bf16 %v2768_v18, %v2766_v17 }
  0x79   :  { %629 = vmatmul.mubr.f32.vlgmr.msra.gmra.mrb[0].mxu1 %v2589_v63  ;;  %v2835_v63 = vsub.f32 %v2689_v10, %v2801_v35  ;;  %v1783_v10 = vsub.f32 %v2781_v0, %v1782_v3  ;;  %v2319_v48 = vpack.c.bf16 %v1782_v3, %v1770_v60  ;;  %v2321_v51 = vpack.c.bf16 %v1788_v42, %v1776_v31 }
  0x7a   :  { %2258 = vmatpush1.bf16.xpose.msra.mxu1 %v2783_v4  ;;  %709 = vmatprep.mubr.f32.mxu1 %v708_v19  ;;  %v2880_v19 = vsub.f32 %v64_v56, %v2872_v12 }
  0x7b   :  { %1615 = vmatpush1.xpose.msra.mxu0 %v2544_v39  ;;  %643 = vmatprep.subr.mxu1 %v2785_v13  ;;  %v2850_v39 = vsub.f32 %v65_v14, %v2816_v59  ;;  %v1760_v9 = vand.u32 4294901760, %v2835_v63  ;;  %v1784_v8 = vand.u32 4294901760, %v1783_v10  ;;  %v714_v14 = vand.u32 4294901760, %v713_v45 }
  0x7c   :  { %2304 = vmatprep.subr.bf16.mxu0 %v2814_v57  ;;  %v2309_v10 = vpack.c.bf16 %v1790_v26, %v1778_v54  ;;  %v1800_v45 = vand.u32 4294901760, %v2880_v19 }
  0x7d   :  { %v1794_v25 = vand.u32 4294901760, %v2850_v39  ;;  %v1761_v58 = vsub.f32 %v2835_v63, %v1760_v9  ;;  %v2307_v22 = vpack.c.bf16 %v1784_v8, %v1772_v28  ;;  %v2313_v28 = vpack.c.bf16 %v2806_v50, %v2804_v40 }
  0x7e   :  { %1677 = vmatmul.mubr.f32.vlgmr.msra.gmra.mrb[0].mxu0 %v2619_v32  ;;  %v747_v32 = vsub.f32 %v2812_v38, %v746_v43  ;;  %v1801_v5 = vsub.f32 %v2880_v19, %v1800_v45  ;;  %v2271_v8 = vpack.c.bf16 %v734_v16, %v722_v11 }
  0x7f   :  { %2306 = vmatpush1.bf16.xpose.msra.mxu0 %v2821_v6  ;;  %1757 = vmatprep.mubr.f32.mxu0 %v1756_v29  ;;  %v1795_v23 = vsub.f32 %v2850_v39, %v1794_v25  ;;  %v1762_v29 = vand.u32 4294901760, %v1761_v58 }
  0x80   :  { %1691 = vmatprep.subr.mxu0 %v2816_v59  ;;  %v748_v20 = vand.u32 4294901760, %v747_v32  ;;  %v1802_v36 = vand.u32 4294901760, %v1801_v5  ;;  %v2311_v32 = vpack.c.bf16 %v2781_v0, %v2779_v62 }
  0x81   :  { %v1796_v56 = vand.u32 4294901760, %v1795_v23 }
  0x82   :  { %645 = vmatpush1.xpose.msra.mxu1 %v2823_v7 }
  0x83   :  { %2260 = vmatprep.subr.bf16.mxu1 %v2259_v2  ;;  %v754_v2 = vand.u32 4294901760, %v753_v52 }
  0x85   :  { %715 = vmatmul.mubr.f32.vlgmr.msra.gmra.mrb[0].mxu1 %v714_v14 }
  0x86   :  { %2262 = vmatpush1.bf16.xpose.msra.mxu1 %v2261_v41  ;;  %815 = vmatprep.mubr.f32.mxu1 %v2730_v24 }
  0x87   :  { %1693 = vmatpush1.xpose.msra.mxu0 %v2872_v12  ;;  %749 = vmatprep.subr.mxu1 %v748_v20 }
  0x88   :  { %2308 = vmatprep.subr.bf16.mxu0 %v2307_v22 }
  0x8a   :  { %1763 = vmatmul.mubr.f32.vlgmr.msra.gmra.mrb[0].mxu0 %v1762_v29 }
  0x8b   :  { %2310 = vmatpush1.bf16.xpose.msra.mxu0 %v2309_v10  ;;  %1863 = vmatprep.mubr.f32.mxu0 %v2742_v44 }
  0x8c   :  { %1797 = vmatprep.subr.mxu0 %v1796_v56 }
  0x8e   :  { %755 = vmatpush1.xpose.msra.mxu1 %v754_v2 }
  0x8f   :  { %2264 = vmatprep.subr.bf16.mxu1 %v2263_v30 }
  0x91   :  { %817 = vmatmul.mubr.f32.vlgmr.msra.gmra.mrb[0].mxu1 %v2763_v46 }
  0x92   :  { %2266 = vmatpush1.bf16.xpose.msra.mxu1 %v2265_v47  ;;  %900 = vmatprep.mubr.f32.mxu1 %v2738_v33  ;;  %v2273_v33 = vpack.c.bf16 %v740_v34, %v728_v27 }
  0x93   :  { %1803 = vmatpush1.xpose.msra.mxu0 %v1802_v36  ;;  %836 = vmatprep.subr.mxu1 %v2812_v38 }
  0x94   :  { %2312 = vmatprep.subr.bf16.mxu0 %v2311_v32 }
  0x96   :  { %1865 = vmatmul.mubr.f32.vlgmr.msra.gmra.mrb[0].mxu0 %v2801_v35 }
  0x97   :  { %2314 = vmatpush1.bf16.xpose.msra.mxu0 %v2313_v28  ;;  %1948 = vmatprep.mubr.f32.mxu0 %v2757_v61 }
  0x98   :  { %1884 = vmatprep.subr.mxu0 %v2850_v39 }
  0x9a   :  { %839 = vmatpush1.xpose.msra.mxu1 %v2853_v53 }
  0x9b   :  { %2268 = vmatprep.subr.bf16.mxu1 %v2774_v49 }
  0x9d   :  { %903 = vmatmul.mubr.f32.vlgmr.msra.gmra.mrb[0].mxu1 %v2795_v37 }
  0x9e   :  { %2270 = vmatpush1.bf16.xpose.msra.mxu1 %v2783_v4  ;;  %981 = vmatprep.mubr.f32.mxu1 %v706_v21 }
  0x9f   :  { %1887 = vmatpush1.xpose.msra.mxu0 %v2880_v19  ;;  %917 = vmatprep.subr.mxu1 %v2785_v13 }
  0xa0   :  { %2316 = vmatprep.subr.bf16.mxu0 %v2814_v57 }
  0xa2   :  { %1951 = vmatmul.mubr.f32.vlgmr.msra.gmra.mrb[0].mxu0 %v2835_v63 }
  0xa3   :  { %2318 = vmatpush1.bf16.xpose.msra.mxu0 %v2821_v6  ;;  %2029 = vmatprep.mubr.f32.mxu0 %v1754_v55 }
  0xa4   :  { %1965 = vmatprep.subr.mxu0 %v2816_v59 }
  0xa6   :  { %919 = vmatpush1.xpose.msra.mxu1 %v2823_v7 }
  0xa7   :  { %2272 = vmatprep.subr.bf16.mxu1 %v2271_v8 }
  0xa9   :  { %985 = vmatmul.mubr.f32.vlgmr.msra.gmra.mrb[0].mxu1 %v712_v1 }
  0xaa   :  { %2274 = vmatpush1.bf16.xpose.msra.mxu1 %v2273_v33  ;;  %1073 = vmatprep.mubr.f32.mxu1 %v2730_v24 }
  0xab   :  { %1967 = vmatpush1.xpose.msra.mxu0 %v2872_v12  ;;  %1009 = vmatprep.subr.mxu1 %v746_v43 }
  0xac   :  { %2320 = vmatprep.subr.bf16.mxu0 %v2319_v48 }
  0xae   :  { %2033 = vmatmul.mubr.f32.vlgmr.msra.gmra.mrb[0].mxu0 %v1760_v9 }
  0xaf   :  { %2322 = vmatpush1.bf16.xpose.msra.mxu0 %v2321_v51  ;;  %2121 = vmatprep.mubr.f32.mxu0 %v2742_v44 }
  0xb0   :  { %2057 = vmatprep.subr.mxu0 %v1794_v25 }
  0xb2   :  { %1013 = vmatpush1.xpose.msra.mxu1 %v752_v15 }
  0xb3   :  { %2276 = vmatprep.subr.bf16.mxu1 %v2774_v49 }
  0xb5   :  { %1075 = vmatmul.mubr.f32.vlgmr.msra.gmra.mrb[0].mxu1 %v2763_v46 }
  0xb6   :  { %2278 = vmatpush1.bf16.xpose.msra.mxu1 %v2783_v4  ;;  %1151 = vmatprep.mubr.f32.mxu1 %v2730_v24  ;;  %v68_v24 = vstv %s2982_s2  ;;  %s2430_s2 = scalar_lea.vmem %s2221_s12, 32 }
  0xb7   :  { %2061 = vmatpush1.xpose.msra.mxu0 %v1800_v45  ;;  %1089 = vmatprep.subr.mxu1 %v2785_v13  ;;  %p2432_p4 = scmp.lt.s32.totalorder %s2430_s2, %s2426_s13 }
  0xb8   :  { %2324 = vmatprep.subr.bf16.mxu0 %v2814_v57 }
  0xb9   :  { %p2433_p5 = por %p2432_p4, %p2431_p3 }
  0xba   :  { %2123 = vmatmul.mubr.f32.vlgmr.msra.gmra.mrb[0].mxu0 %v2801_v35 }
  0xbb   :  { %2326 = vmatpush1.bf16.xpose.msra.mxu0 %v2821_v6  ;;  %2199 = vmatprep.mubr.f32.mxu0 %v2742_v44  ;;  %p2434_p6 = pnand %p2433_p5, %p2427_p2 }
  0xbc   :  { %2137 = vmatprep.subr.mxu0 %v2816_v59 }
  0xbe   :  { %1091 = vmatpush1.xpose.msra.mxu1 %v2823_v7 }
  0xc1   :  { %1153 = vmatmul.mubr.f32.vlgmr.msra.gmra.mrb[0].mxu1 %v2763_v46 }
  0xc3   :  { %2139 = vmatpush1.xpose.msra.mxu0 %v2872_v12 }
  0xc6   :  { %2201 = vmatmul.mubr.f32.vlgmr.msra.gmra.mrb[0].mxu0 %v2801_v35 }
 0x194   :  { %v1154_v21 = vpop.f32.mrb[0].mxu1 }
 0x195   :  { %v1156_v61 = vpop.f32.mrb[1].mxu1  ;;  %v2327_v11 = vadd.f32 %v1154_v21, %v68_v24 }
 0x199   :  { %v2202_v16 = vpop.f32.mrb[0].mxu0 }
 0x19a   :  { %v2328_v17 = vadd.f32 %v2327_v11, %v2202_v16  ;;  %v2204_v44 = vpop.f32.mrb[1].mxu0 }
 0x19c   :  { %v2230_v18 = vmul.f32 -1.442695, %v2328_v17 }
 0x19e   :  { %2378 = vpow2.f32 %v2230_v18 }
 0x1a8   :  { %v2379_v49 = vpop.eup %2378 }
 0x1a9   :  { %v2209_v55 = vadd.f32 1.0, %v2379_v49 }
 0x1ab   :  { %2380 = vrcp.f32 %v2209_v55 }
 0x1b5   :  { %v2381_v46 = vpop.eup %2380 }
 0x1b6   :  { %2213 = vst.msk [vmem:[#allocation8] sm:$0x1] %vm2212_vm0, %v2381_v46 }
 0x1b7   :  { %2437 = shalt.err (!%p2434_p6)
}
 0x1b8   :  { %s2438_s16 = scalar_lea.hbm %s2983_s3, 16 }
 0x1b9   :  { %p2439_p7 = scmp.ne.s32.totalorder %s2983_s3, %s2438_s16  ;;  %p2442_p8 = scmp.lt.u32.totalorder %s2438_s16, %s2983_s3 }
 0x1bb   :  { %p2444_p9 = pnand %p2442_p8, %p2439_p7 }
 0x1bd   :  { %2447 = shalt.err (!%p2444_p9)
}
 0x1be   :  { %2223 = dma.vmem_to_hbm [thread:$0]  %s2221_s12, 16, %s2983_s3, [#allocation5]  }
 0x1bf   :  { %2452 = dma.done.wait [#allocation5], 16  }
 0x1c0   :  { %2453 = vsyncadd [#allocation5], 4294967280 }
 0x1c1   :  { %2227 = vsyncpa [#allocation4], 1 }
 0x1c2   :  { %2228 = vsyncpa [#allocation7], 1 }
 0x1c3   :  { %2229 = vsyncpa [#allocation5], 1 }

</bundles_post_ra>
